<compile_context>
chip_gen: v7x
topology: tpu7x:2x2x1
jax: 0.10.0
libtpu: 0.0.40
codegen_flags: <defaults>
</compile_context>

<pallas_src>
from typing import Any, NamedTuple

import jax
import jax.numpy as jnp
from jax.experimental import pallas as pl
from jax.experimental.pallas import tpu as pltpu


_LANE = 128      # vreg lane width
_SUBLANE = 8     # vreg sublane count (f32)


def _leaky_relu(x, slope=0.01):
    return jnp.where(x > 0, x, slope * x)


def _round_up(n, m):
    return ((n + m - 1) // m) * m


# --------------------------------------------------------------------------
# Kernel
# --------------------------------------------------------------------------
def topic_module_kernel(x_ref, w1_ref, b1_ref, w2_ref, b2_ref, o_ref):
    # ---- Layer 1: Linear(H -> H) + LeakyReLU on the MXU, f32 accumulation
    # regardless of the (possibly bf16) input dtype.
    h = jnp.dot(x_ref[...], w1_ref[...], preferred_element_type=jnp.float32)
    h = _leaky_relu(h + b1_ref[...])                       # bias broadcast (1, H_pad)

    # ---- Layer 2: Linear(H -> 1) + LeakyReLU on VPU (multiply) + XLU (lane
    # reduction).  Keeps the MXU free and avoids a 1-lane-wide matvec.
    y = jnp.sum(h * w2_ref[...], axis=-1, keepdims=True)   # (TILE_N, 1)
    y = _leaky_relu(y + b2_ref[0, 0])                      # b2 is an SMEM scalar

    # ---- Lane-packed store: (TILE_N, 1) block -> tiny output traffic.
    o_ref[...] = y.astype(o_ref.dtype)


# --------------------------------------------------------------------------
# Parameter preparation (done ONCE, outside the per-call hot path)
# --------------------------------------------------------------------------
class TopicParams(NamedTuple):
    w1: jax.Array        # (H_pad, H_pad), mm_dtype
    b1: jax.Array        # (1, H_pad), f32
    w2: jax.Array        # (1, H_pad), f32 (the (H,1) column stored as a row)
    b2: jax.Array        # (1, 1), f32 (lives in SMEM)
    hidden_dim: int
    h_pad: int
    mm_dtype: Any


def prepare_topic_params(w1, b1, w2, b2, *, use_bf16=False):
    """Pad (and optionally cast) the weights once, at init time.

    Zero padding is exact: padded W1 columns / b1 / w2 entries contribute
    nothing (LeakyReLU(0) = 0) and padded output rows are sliced off.
    """
    h = w1.shape[0]
    h_pad = _round_up(h, _LANE)
    mm_dtype = jnp.bfloat16 if use_bf16 else jnp.float32

    w1p = jnp.pad(w1.astype(jnp.float32),
                  ((0, h_pad - h), (0, h_pad - h))).astype(mm_dtype)
    b1p = jnp.pad(jnp.reshape(b1, (1, h)).astype(jnp.float32),
                  ((0, 0), (0, h_pad - h)))
    w2p = jnp.pad(jnp.reshape(w2, (1, h)).astype(jnp.float32),
                  ((0, 0), (0, h_pad - h)))
    b2p = jnp.reshape(b2, (1, 1)).astype(jnp.float32)
    return TopicParams(w1p, b1p, w2p, b2p, h, h_pad, mm_dtype)


# --------------------------------------------------------------------------
# Tiling choice
# --------------------------------------------------------------------------
def _choose_tiling(n, h_pad, x_itemsize, tile_n):
    n8 = _round_up(max(n, 1), _SUBLANE)
    if tile_n is None:
        # Big row tiles amortize the ~0.35 us/step overhead; cap the x tile at
        # ~2 MiB per buffer so double-buffering stays comfortably in VMEM.
        tile_n = min(2048, max(_SUBLANE, (2 << 20) // max(1, h_pad * x_itemsize)))
    tile_n = _round_up(min(tile_n, n8), _SUBLANE)
    steps = pl.cdiv(n8, tile_n)
    if steps == 1 and n8 >= 2 * _SUBLANE:
        steps = 2            # give v7x's second TensorCore a row tile
    tile_n = _round_up(pl.cdiv(n8, steps), _SUBLANE)   # balanced tiles, less padding
    n_pad = _round_up(n8, tile_n)
    return tile_n, n_pad


# --------------------------------------------------------------------------
# Forward wrapper
# --------------------------------------------------------------------------
def topic_module_forward(x, params: TopicParams, *, tile_n=None):
    """x: (N, H); params from prepare_topic_params() -> (N, 1) in x.dtype."""
    n, h = x.shape
    if h != params.hidden_dim:
        raise ValueError(f"hidden_dim mismatch: x has {h}, params expect {params.hidden_dim}")
    h_pad = params.h_pad
    mm_dtype = params.mm_dtype
    itemsize = jnp.dtype(mm_dtype).itemsize

    tile_n, n_pad = _choose_tiling(n, h_pad, itemsize, tile_n)
    grid = (n_pad // tile_n,)

    xp = x.astype(mm_dtype)
    if (n_pad != n) or (h_pad != h):
        # Only materialize a padded copy of x when the shape actually needs it.
        xp = jnp.pad(xp, ((0, n_pad - n), (0, h_pad - h)))

    cost = pl.CostEstimate(
        flops=2 * n_pad * h_pad * h_pad + 5 * n_pad * h_pad,
        transcendentals=0,
        bytes_accessed=(n_pad * h_pad * itemsize       # x
                        + h_pad * h_pad * itemsize     # W1 (grid-invariant, read once)
                        + 2 * h_pad * 4 + 4            # b1, w2 row, b2 scalar
                        + n_pad * 4),                  # lane-packed (N_pad, 1) output
    )

    def call(single_buffer_weights):
        res_kw = ({"pipeline_mode": pl.Buffered(1)}
                  if single_buffer_weights else {})
        in_specs = [
            pl.BlockSpec((tile_n, h_pad), lambda i: (i, 0)),             # x rows, pipelined
            pl.BlockSpec((h_pad, h_pad), lambda i: (0, 0), **res_kw),    # W1 resident
            pl.BlockSpec((1, h_pad), lambda i: (0, 0), **res_kw),        # b1 row
            pl.BlockSpec((1, h_pad), lambda i: (0, 0), **res_kw),        # W2 as a row
            pl.BlockSpec(memory_space=pltpu.MemorySpace.SMEM),           # b2 scalar
        ]
        return pl.pallas_call(
            topic_module_kernel,
            out_shape=jax.ShapeDtypeStruct((n_pad, 1), jnp.float32),
            grid=grid,
            in_specs=in_specs,
            out_specs=pl.BlockSpec((tile_n, 1), lambda i: (i, 0)),
            compiler_params=pltpu.CompilerParams(
                dimension_semantics=("parallel",),   # rows shard across v7x's 2 TCs
            ),
            cost_estimate=cost,
        )(xp, params.w1, params.b1, params.w2, params.b2)

    try:
        out_padded = call(True)
    except Exception:
        # Fallback if this JAX build rejects Buffered(1) on pallas_call specs;
        # identical semantics, just double-buffers the grid-invariant weights.
        out_padded = call(False)

    # Slice off padded rows -> (N, 1).
    return out_padded[:n].astype(x.dtype)


# --------------------------------------------------------------------------
# Reference + init
# --------------------------------------------------------------------------
def init_params(key, hidden_dim):
    """Deterministic PyTorch-style Linear init (uniform +-1/sqrt(fan_in))."""
    k1, k2, k3, k4 = jax.random.split(key, 4)
    bound1 = 1.0 / jnp.sqrt(hidden_dim)
    w1 = jax.random.uniform(k1, (hidden_dim, hidden_dim), jnp.float32, -bound1, bound1)
    b1 = jax.random.uniform(k2, (1, hidden_dim), jnp.float32, -bound1, bound1)
    w2 = jax.random.uniform(k3, (hidden_dim, 1), jnp.float32, -bound1, bound1)
    b2 = jax.random.uniform(k4, (1, 1), jnp.float32, -bound1, bound1)
    return w1, b1, w2, b2


def reference_forward(x, w1, b1, w2, b2):
    h = _leaky_relu(x @ w1 + b1)
    return _leaky_relu(h @ w2 + b2)


if __name__ == "__main__":
    N, HIDDEN = 8, 32  # N snapshot readouts, hidden_dim
    key = jax.random.PRNGKey(0)
    kx, kp = jax.random.split(key)
    x = jax.random.normal(kx, (N, HIDDEN), jnp.float32)
    w1, b1, w2, b2 = init_params(kp, HIDDEN)
    ref = reference_forward(x, w1, b1, w2, b2)

    # f32 path: bit-for-bit comparable with the PyTorch/f32 reference.
    params_f32 = prepare_topic_params(w1, b1, w2, b2, use_bf16=False)
    out = jax.block_until_ready(topic_module_forward(x, params_f32))
    assert out.shape == (N, 1), out.shape
    assert jnp.allclose(out, ref, atol=1e-5, rtol=1e-5), "f32 mismatch vs reference"

    # bf16-MXU-input path (gated behind the flag): looser tolerance by design.
    params_bf16 = prepare_topic_params(w1, b1, w2, b2, use_bf16=True)
    out_bf16 = jax.block_until_ready(topic_module_forward(x, params_bf16))
    assert out_bf16.shape == (N, 1), out_bf16.shape
    assert jnp.allclose(out_bf16, ref, atol=5e-2, rtol=5e-2), "bf16 mismatch vs reference"

    # TODO(synk): predict()/get_topic_loss() are inference-side helpers
    # (get_topic_loss returns None); only forward() is the kernel hot path.
    # Dropout(p=0) in the module is an identity and is omitted.
    print("KERNEL_OK")
</pallas_src>

<mosaic_0001>
module attributes {stable_mosaic.version = 11 : i64} {
  func.func @topic_module_kernel(%arg0: i32, %arg1: memref<8x128xf32, #tpu.memory_space<vmem>>, %arg2: memref<128x128xf32, #tpu.memory_space<vmem>>, %arg3: memref<1x128xf32, #tpu.memory_space<vmem>>, %arg4: memref<1x128xf32, #tpu.memory_space<vmem>>, %arg5: memref<1x1xf32, #tpu.memory_space<smem>>, %arg6: memref<8x1xf32, #tpu.memory_space<vmem>>) attributes {dimension_semantics = [#tpu.dimension_semantics<parallel>], iteration_bounds = array<i64: 1>, scalar_prefetch = 0 : i64, scratch_operands = 0 : i64, tpu.core_type = #tpu.core_type<tc>, window_params = [{transform_indices = @transform_0, window_bounds = array<i64: 8, 128>}, {pipeline_mode = #tpu.pipeline_mode<synchronous>, transform_indices = @transform_1, window_bounds = array<i64: 128, 128>}, {pipeline_mode = #tpu.pipeline_mode<synchronous>, transform_indices = @transform_2, window_bounds = array<i64: 1, 128>}, {pipeline_mode = #tpu.pipeline_mode<synchronous>, transform_indices = @transform_3, window_bounds = array<i64: 1, 128>}, {transform_indices = @transform_4, window_bounds = array<i64: 1, 1>}, {transform_indices = @transform_5, window_bounds = array<i64: 8, 1>}]} {
    %c0 = arith.constant 0 : index
    %c0_0 = arith.constant 0 : index
    %0 = vector.load %arg1[%c0, %c0_0] : memref<8x128xf32, #tpu.memory_space<vmem>>, vector<8x128xf32>
    %c0_1 = arith.constant 0 : index
    %c0_2 = arith.constant 0 : index
    %1 = vector.load %arg2[%c0_1, %c0_2] : memref<128x128xf32, #tpu.memory_space<vmem>>, vector<128x128xf32>
    %cst = arith.constant dense<0.000000e+00> : vector<8x128xf32>
    %2 = tpu.matmul %0, %1, %cst {dimension_numbers = #tpu.dot_dimension_numbers<[1], [0], [0], [1], [0, 0, 1, 1], [], []>} : vector<8x128xf32>, vector<128x128xf32>, vector<8x128xf32> -> vector<8x128xf32>
    %c0_3 = arith.constant 0 : index
    %c0_4 = arith.constant 0 : index
    %3 = vector.load %arg3[%c0_3, %c0_4] : memref<1x128xf32, #tpu.memory_space<vmem>>, vector<1x128xf32>
    %4 = vector.broadcast %3 : vector<1x128xf32> to vector<8x128xf32>
    %5 = arith.addf %2, %4 : vector<8x128xf32>
    %cst_5 = arith.constant 0.000000e+00 : f32
    %6 = vector.broadcast %cst_5 : f32 to vector<8x128xf32>
    %7 = arith.cmpf ogt, %5, %6 : vector<8x128xf32>
    %cst_6 = arith.constant 0.00999999977 : f32
    %8 = vector.broadcast %cst_6 : f32 to vector<8x128xf32>
    %9 = arith.mulf %8, %5 : vector<8x128xf32>
    %10 = arith.select %7, %5, %9 : vector<8x128xi1>, vector<8x128xf32>
    %c0_7 = arith.constant 0 : index
    %c0_8 = arith.constant 0 : index
    %11 = vector.load %arg4[%c0_7, %c0_8] : memref<1x128xf32, #tpu.memory_space<vmem>>, vector<1x128xf32>
    %12 = vector.broadcast %11 : vector<1x128xf32> to vector<8x128xf32>
    %13 = arith.mulf %10, %12 : vector<8x128xf32>
    %cst_9 = arith.constant dense<0.000000e+00> : vector<8xf32>
    %14 = vector.multi_reduction <add>, %13, %cst_9 [1] : vector<8x128xf32> to vector<8xf32>
    %15 = vector.shape_cast %14 : vector<8xf32> to vector<8x1xf32>
    %c0_10 = arith.constant 0 : index
    %c0_11 = arith.constant 0 : index
    %16 = memref.load %arg5[%c0_10, %c0_11] : memref<1x1xf32, #tpu.memory_space<smem>>
    %17 = vector.broadcast %16 : f32 to vector<8x1xf32>
    %18 = arith.addf %15, %17 : vector<8x1xf32>
    %cst_12 = arith.constant 0.000000e+00 : f32
    %19 = vector.broadcast %cst_12 : f32 to vector<8x1xf32>
    %20 = arith.cmpf ogt, %18, %19 : vector<8x1xf32>
    %cst_13 = arith.constant 0.00999999977 : f32
    %21 = vector.broadcast %cst_13 : f32 to vector<8x1xf32>
    %22 = arith.mulf %21, %18 : vector<8x1xf32>
    %23 = arith.select %20, %18, %22 : vector<8x1xi1>, vector<8x1xf32>
    %c0_14 = arith.constant 0 : index
    %c0_15 = arith.constant 0 : index
    %24 = vector.load %arg6[%c0_14, %c0_15] : memref<8x1xf32, #tpu.memory_space<vmem>>, vector<8x1xf32>
    tpu.vector_store %arg6[%c0_14, %c0_15], %23 {strides = array<i32>} : memref<8x1xf32, #tpu.memory_space<vmem>>, vector<8x1xf32>,
    return
  }
  func.func @transform_0(%arg0: i32) -> (i32, i32) {
    %c0_i32 = arith.constant 0 : i32
    %c0_i32_0 = arith.constant 0 : i32
    return %arg0, %c0_i32 : i32, i32
  }
  func.func @transform_1(%arg0: i32) -> (i32, i32) {
    %c0_i32 = arith.constant 0 : i32
    %c0_i32_0 = arith.constant 0 : i32
    %c0_i32_1 = arith.constant 0 : i32
    return %c0_i32, %c0_i32_0 : i32, i32
  }
  func.func @transform_2(%arg0: i32) -> (i32, i32) {
    %c0_i32 = arith.constant 0 : i32
    %c0_i32_0 = arith.constant 0 : i32
    %c0_i32_1 = arith.constant 0 : i32
    return %c0_i32, %c0_i32_0 : i32, i32
  }
  func.func @transform_3(%arg0: i32) -> (i32, i32) {
    %c0_i32 = arith.constant 0 : i32
    %c0_i32_0 = arith.constant 0 : i32
    %c0_i32_1 = arith.constant 0 : i32
    return %c0_i32, %c0_i32_0 : i32, i32
  }
  func.func @transform_4(%arg0: i32) -> (i32, i32) {
    %c0_i32 = arith.constant 0 : i32
    %c0_i32_0 = arith.constant 0 : i32
    %c0_i32_1 = arith.constant 0 : i32
    return %c0_i32, %c0_i32_0 : i32, i32
  }
  func.func @transform_5(%arg0: i32) -> (i32, i32) {
    %c0_i32 = arith.constant 0 : i32
    %c0_i32_0 = arith.constant 0 : i32
    return %arg0, %c0_i32 : i32, i32
  }
}

module attributes {stable_mosaic.version = 11 : i64} {
  func.func @topic_module_kernel(%arg0: i32, %arg1: memref<8x128xf32, #tpu.memory_space<vmem>>, %arg2: memref<128x128xf32, #tpu.memory_space<vmem>>, %arg3: memref<1x128xf32, #tpu.memory_space<vmem>>, %arg4: memref<1x128xf32, #tpu.memory_space<vmem>>, %arg5: memref<1x1xf32, #tpu.memory_space<smem>>, %arg6: memref<8x1xf32, #tpu.memory_space<vmem>>) attributes {dimension_semantics = [#tpu.dimension_semantics<parallel>], iteration_bounds = array<i64: 1>, scalar_prefetch = 0 : i64, scratch_operands = 0 : i64, tpu.core_type = #tpu.core_type<tc>, window_params = [{transform_indices = @transform_0, window_bounds = array<i64: 8, 128>}, {pipeline_mode = #tpu.pipeline_mode<synchronous>, transform_indices = @transform_1, window_bounds = array<i64: 128, 128>}, {pipeline_mode = #tpu.pipeline_mode<synchronous>, transform_indices = @transform_2, window_bounds = array<i64: 1, 128>}, {pipeline_mode = #tpu.pipeline_mode<synchronous>, transform_indices = @transform_3, window_bounds = array<i64: 1, 128>}, {transform_indices = @transform_4, window_bounds = array<i64: 1, 1>}, {transform_indices = @transform_5, window_bounds = array<i64: 8, 1>}]} {
    %c0 = arith.constant 0 : index
    %c0_0 = arith.constant 0 : index
    %0 = vector.load %arg1[%c0, %c0_0] : memref<8x128xf32, #tpu.memory_space<vmem>>, vector<8x128xf32>
    %c0_1 = arith.constant 0 : index
    %c0_2 = arith.constant 0 : index
    %1 = vector.load %arg2[%c0_1, %c0_2] : memref<128x128xf32, #tpu.memory_space<vmem>>, vector<128x128xf32>
    %cst = arith.constant dense<0.000000e+00> : vector<8x128xf32>
    %2 = tpu.matmul %0, %1, %cst {dimension_numbers = #tpu.dot_dimension_numbers<[1], [0], [0], [1], [0, 0, 1, 1], [], []>} : vector<8x128xf32>, vector<128x128xf32>, vector<8x128xf32> -> vector<8x128xf32>
    %c0_3 = arith.constant 0 : index
    %c0_4 = arith.constant 0 : index
    %3 = vector.load %arg3[%c0_3, %c0_4] : memref<1x128xf32, #tpu.memory_space<vmem>>, vector<1x128xf32>
    %4 = vector.broadcast %3 : vector<1x128xf32> to vector<8x128xf32>
    %5 = arith.addf %2, %4 : vector<8x128xf32>
    %cst_5 = arith.constant 0.000000e+00 : f32
    %6 = vector.broadcast %cst_5 : f32 to vector<8x128xf32>
    %7 = arith.cmpf ogt, %5, %6 : vector<8x128xf32>
    %cst_6 = arith.constant 0.00999999977 : f32
    %8 = vector.broadcast %cst_6 : f32 to vector<8x128xf32>
    %9 = arith.mulf %8, %5 : vector<8x128xf32>
    %10 = arith.select %7, %5, %9 : vector<8x128xi1>, vector<8x128xf32>
    %c0_7 = arith.constant 0 : index
    %c0_8 = arith.constant 0 : index
    %11 = vector.load %arg4[%c0_7, %c0_8] : memref<1x128xf32, #tpu.memory_space<vmem>>, vector<1x128xf32>
    %12 = vector.broadcast %11 : vector<1x128xf32> to vector<8x128xf32>
    %13 = arith.mulf %10, %12 : vector<8x128xf32>
    %cst_9 = arith.constant dense<0.000000e+00> : vector<8xf32>
    %14 = vector.multi_reduction <add>, %13, %cst_9 [1] : vector<8x128xf32> to vector<8xf32>
    %15 = vector.shape_cast %14 : vector<8xf32> to vector<8x1xf32>
    %c0_10 = arith.constant 0 : index
    %c0_11 = arith.constant 0 : index
    %16 = memref.load %arg5[%c0_10, %c0_11] : memref<1x1xf32, #tpu.memory_space<smem>>
    %17 = vector.broadcast %16 : f32 to vector<8x1xf32>
    %18 = arith.addf %15, %17 : vector<8x1xf32>
    %cst_12 = arith.constant 0.000000e+00 : f32
    %19 = vector.broadcast %cst_12 : f32 to vector<8x1xf32>
    %20 = arith.cmpf ogt, %18, %19 : vector<8x1xf32>
    %cst_13 = arith.constant 0.00999999977 : f32
    %21 = vector.broadcast %cst_13 : f32 to vector<8x1xf32>
    %22 = arith.mulf %21, %18 : vector<8x1xf32>
    %23 = arith.select %20, %18, %22 : vector<8x1xi1>, vector<8x1xf32>
    %c0_14 = arith.constant 0 : index
    %c0_15 = arith.constant 0 : index
    %24 = vector.load %arg6[%c0_14, %c0_15] : memref<8x1xf32, #tpu.memory_space<vmem>>, vector<8x1xf32>
    tpu.vector_store %arg6[%c0_14, %c0_15], %23 {strides = array<i32>} : memref<8x1xf32, #tpu.memory_space<vmem>>, vector<8x1xf32>,
    return
  }
  func.func @transform_0(%arg0: i32) -> (i32, i32) {
    %c0_i32 = arith.constant 0 : i32
    %c0_i32_0 = arith.constant 0 : i32
    return %arg0, %c0_i32 : i32, i32
  }
  func.func @transform_1(%arg0: i32) -> (i32, i32) {
    %c0_i32 = arith.constant 0 : i32
    %c0_i32_0 = arith.constant 0 : i32
    %c0_i32_1 = arith.constant 0 : i32
    return %c0_i32, %c0_i32_0 : i32, i32
  }
  func.func @transform_2(%arg0: i32) -> (i32, i32) {
    %c0_i32 = arith.constant 0 : i32
    %c0_i32_0 = arith.constant 0 : i32
    %c0_i32_1 = arith.constant 0 : i32
    return %c0_i32, %c0_i32_0 : i32, i32
  }
  func.func @transform_3(%arg0: i32) -> (i32, i32) {
    %c0_i32 = arith.constant 0 : i32
    %c0_i32_0 = arith.constant 0 : i32
    %c0_i32_1 = arith.constant 0 : i32
    return %c0_i32, %c0_i32_0 : i32, i32
  }
  func.func @transform_4(%arg0: i32) -> (i32, i32) {
    %c0_i32 = arith.constant 0 : i32
    %c0_i32_0 = arith.constant 0 : i32
    %c0_i32_1 = arith.constant 0 : i32
    return %c0_i32, %c0_i32_0 : i32, i32
  }
  func.func @transform_5(%arg0: i32) -> (i32, i32) {
    %c0_i32 = arith.constant 0 : i32
    %c0_i32_0 = arith.constant 0 : i32
    return %arg0, %c0_i32 : i32, i32
  }
}

</mosaic_0001>

<bundles_post_ra>
// kernel: tpu_custom_call.1
= control target key start
LH: loop header
LB: loop body
LE: loop exit
PB: predicated region body
PF: predicated region fallthrough
CT: control target
= control target key end

     0   :  { %11 = vsyncpa [#allocation4], 0  ;;  %s381_s0 = inlined_call_operand.hbm [shape: f32[8,128], index: 0, kind: input, shape index: {}]   ;;  %s382_s1 = inlined_call_operand.hbm [shape: f32[128,128], index: 1, kind: input, shape index: {}]   ;;  %s383_s2 = inlined_call_operand.vmem [shape: f32[1,128], index: 2, kind: input, shape index: {}]   ;;  %s384_s3 = inlined_call_operand.vmem [shape: f32[1,128], index: 3, kind: input, shape index: {}]   ;;  %s385_s4 = inlined_call_operand.<no memory space> [shape: f32[1,1], index: 4, kind: input, shape index: {}]   ;;  %s386_s5 = inlined_call_operand.vmem [shape: f32[8,1], index: 5, kind: output, shape index: {}]  }
   0x1   :  { %12 = vsyncpa [#allocation6], 0  ;;  %s301_s18 = smov [#allocation3]   ;;  %s302_s20 = smov [#allocation5]  }
   0x2   :  { %s19_s19 = sshll.u32 %s301_s18, 4  ;;  %s28_s21 = sshll.u32 %s302_s20, 4  ;;  %s20_s19 = int_to_ptr.vmem [resolvable:$true] %s19_s19  ;;  %s338_s21 = int_to_ptr.vmem [resolvable:$true] %s28_s21 }
   0x3   :  { %s253_s24 = scalar_lea.hbm %s381_s0, 128 }
   0x4   :  { %p254_p0 = scmp.ne.s32.totalorder %s381_s0, %s253_s24  ;;  %p257_p1 = scmp.lt.u32.totalorder %s253_s24, %s381_s0 }
   0x6   :  { %p259_p2 = pnand %p257_p1, %p254_p0 }
   0x8   :  { %262 = shalt.err (!%p259_p2)
}
   0x9   :  { %s263_s29 = scalar_lea.vmem %s20_s19, 128  ;;  %p268_p4 = scmp.lt.s32.totalorder %s20_s19, %s20_s19 }
   0xa   :  { %p264_p3 = scmp.ne.s32.totalorder %s20_s19, %s263_s29  ;;  %p269_p5 = scmp.lt.s32.totalorder %s263_s29, %s263_s29 }
   0xc   :  { %p270_p6 = por %p269_p5, %p268_p4 }
   0xe   :  { %p271_p7 = pnand %p270_p6, %p264_p3 }
  0x10   :  { %274 = shalt.err (!%p271_p7)
}
  0x11   :  { %22 = dma.hbm_to_vmem [thread:$0]  %s381_s0, 128, %s20_s19, [#allocation4]  }
  0x12   :  { %s275_s9 = scalar_lea.hbm %s382_s1, 2048 }
  0x13   :  { %p276_p8 = scmp.ne.s32.totalorder %s382_s1, %s275_s9  ;;  %p279_p9 = scmp.lt.u32.totalorder %s275_s9, %s382_s1 }
  0x15   :  { %p281_p10 = pnand %p279_p9, %p276_p8 }
  0x17   :  { %284 = shalt.err (!%p281_p10)
}
  0x18   :  { %s285_s14 = scalar_lea.vmem %s338_s21, 2048  ;;  %p290_p12 = scmp.lt.s32.totalorder %s338_s21, %s338_s21 }
  0x19   :  { %p286_p11 = scmp.ne.s32.totalorder %s338_s21, %s285_s14  ;;  %p291_p13 = scmp.lt.s32.totalorder %s285_s14, %s285_s14 }
  0x1b   :  { %p292_p0 = por %p291_p13, %p290_p12 }
  0x1d   :  { %p293_p1 = pnand %p292_p0, %p286_p11 }
  0x1f   :  { %296 = shalt.err (!%p293_p1)
}
  0x20   :  { %s303_s0 = smov 128   ;;  %s304_s15 = smov 8  }
  0x21   :  { %34 = dma.hbm_to_vmem [thread:$0]  %s382_s1, 2048, %s338_s21, [#allocation6], %s303_s0, %s303_s0, %s304_s15  }
  0x22   :  { %297 = dma.done.wait [#allocation4], 128  }
  0x23   :  { %298 = vsyncadd [#allocation4], 4294967168 }
  0x24   :  { %299 = dma.done.wait [#allocation6], 2048  }
  0x25   :  { %300 = vsyncadd [#allocation6], 4294965248  ;;  %v305_v0 = vmov 0.0|0.0   ;;  %vm306_vm0 = vmmov 0   ;;  %v307_v1 = vmov 0.0   ;;  %v48_v2 = vld [vmem:[#allocation5] sm:$0xff]  ;;  %v155_v35 = vstv %s385_s4 }
  0x26   :  { %222 = vmatprep.subr.bf16.mxu0 %v305_v0  ;;  %219 = vmatprep.mubr.msk.f32.mxu0 %vm306_vm0, %v307_v1  ;;  %v49_v3 = vld [vmem:[#allocation5 + $0x8] sm:$0xff]  ;;  %v50_v4 = vld [vmem:[#allocation5 + $0x10] sm:$0xff]  ;;  %v51_v6 = vld [vmem:[#allocation5 + $0x18] sm:$0xff]  ;;  %vm160_vm3 = vcmask 7168  }
  0x27   :  { %v223_v5 = vpack.c.bf16 %v49_v3, %v48_v2  ;;  %v226_v7 = vpack.c.bf16 %v51_v6, %v50_v4  ;;  %v52_v8 = vld [vmem:[#allocation5 + $0x20] sm:$0xff]  ;;  %v53_v9 = vld [vmem:[#allocation5 + $0x28] sm:$0xff]  ;;  %v54_v11 = vld [vmem:[#allocation5 + $0x30] sm:$0xff] }
  0x28   :  { %v229_v10 = vpack.c.bf16 %v53_v9, %v52_v8  ;;  %v55_v12 = vld [vmem:[#allocation5 + $0x38] sm:$0xff]  ;;  %v56_v14 = vld [vmem:[#allocation5 + $0x40] sm:$0xff]  ;;  %v57_v15 = vld [vmem:[#allocation5 + $0x48] sm:$0xff] }
  0x29   :  { %224 = vmatpush3.bf16.msra.mxu0 %v223_v5  ;;  %v232_v13 = vpack.c.bf16 %v55_v12, %v54_v11  ;;  %v235_v16 = vpack.c.bf16 %v57_v15, %v56_v14  ;;  %v58_v17 = vld [vmem:[#allocation5 + $0x50] sm:$0xff]  ;;  %v59_v18 = vld [vmem:[#allocation5 + $0x58] sm:$0xff]  ;;  %v60_v20 = vld [vmem:[#allocation5 + $0x60] sm:$0xff] }
  0x2a   :  { %225 = vmatprep.subr.bf16.mxu0 %v305_v0  ;;  %v238_v19 = vpack.c.bf16 %v59_v18, %v58_v17  ;;  %v61_v21 = vld [vmem:[#allocation5 + $0x68] sm:$0xff]  ;;  %v62_v23 = vld [vmem:[#allocation5 + $0x70] sm:$0xff]  ;;  %v63_v24 = vld [vmem:[#allocation5 + $0x78] sm:$0xff] }
  0x2b   :  { %v241_v22 = vpack.c.bf16 %v61_v21, %v60_v20  ;;  %v244_v25 = vpack.c.bf16 %v63_v24, %v62_v23  ;;  %v47_v26 = vld [vmem:[#allocation3] sm:$0xff] }
  0x2c   :  { %v168_v27 = vld [vmem:[%s383_s2] ss:$0 sm:$0xff] }
  0x2d   :  { %227 = vmatpush3.bf16.msra.mxu0 %v226_v7  ;;  %v169_v32 = vld [vmem:[%s384_s3] ss:$0 sm:$0xff] }
  0x2e   :  { %228 = vmatprep.subr.bf16.mxu0 %v305_v0 }
  0x31   :  { %230 = vmatpush3.bf16.msra.mxu0 %v229_v10 }
  0x32   :  { %231 = vmatprep.subr.bf16.mxu0 %v305_v0 }
  0x35   :  { %233 = vmatpush3.bf16.msra.mxu0 %v232_v13 }
  0x36   :  { %234 = vmatprep.subr.bf16.mxu0 %v305_v0 }
  0x39   :  { %236 = vmatpush3.bf16.msra.mxu0 %v235_v16 }
  0x3a   :  { %237 = vmatprep.subr.bf16.mxu0 %v305_v0 }
  0x3d   :  { %239 = vmatpush3.bf16.msra.mxu0 %v238_v19 }
  0x3e   :  { %240 = vmatprep.subr.bf16.mxu0 %v305_v0 }
  0x41   :  { %242 = vmatpush3.bf16.msra.mxu0 %v241_v22 }
  0x42   :  { %243 = vmatprep.subr.bf16.mxu0 %v305_v0 }
  0x45   :  { %245 = vmatpush3.bf16.msra.mxu0 %v244_v25 }
  0x48   :  { %220 = vmatmul.mubr.f32.vlgmr.msra.gmra.mrb[0].mxu0 %v47_v26 }
 0x11b   :  { %v137_v28 = vpop.f32.mrb[0].mxu0 }
 0x11c   :  { %v138_v29 = vadd.f32 %v168_v27, %v137_v28  ;;  %v221_v30 = vpop.f32.mrb[1].mxu0 }
 0x11e   :  { %v142_v31 = vmul.f32 0.01, %v138_v29  ;;  %vm141_vm1 = vcmp.gt.f32.partialorder %v138_v29, 0.0 }
 0x120   :  { %v143_v33 = vsel %vm141_vm1, %v138_v29, %v142_v31 }
 0x121   :  { %v151_v34 = vmul.f32 %v169_v32, %v143_v33 }
 0x123   :  { %152 = vadd.xlane.f32.xlu0 %v151_v34 }
 0x1b0   :  { %v153_v36 = vpop.xlane.xlu0 %152 }
 0x1b1   :  { %v156_v37 = vadd.f32 %v155_v35, %v153_v36 }
 0x1b3   :  { %vm157_vm2 = vcmp.gt.f32.partialorder %v156_v37, 0.0  ;;  %v158_v38 = vmul.f32 0.01, %v156_v37 }
 0x1b5   :  { %v159_v39 = vsel %vm157_vm2, %v156_v37, %v158_v38 }
 0x1b6   :  { %161 = vst.msk [vmem:[%s386_s5] sm:$0xff] %vm160_vm3, %v159_v39 }
 0x1b7   :  { %166 = vsyncpa [#allocation4], 1 }
 0x1b8   :  { %167 = vsyncpa [#allocation6], 1 }

// kernel: tpu_custom_call.1
= control target key start
LH: loop header
LB: loop body
LE: loop exit
PB: predicated region body
PF: predicated region fallthrough
CT: control target
= control target key end

     0   :  { %11 = vsyncpa [#allocation4], 0  ;;  %s381_s0 = inlined_call_operand.hbm [shape: f32[8,128], index: 0, kind: input, shape index: {}]   ;;  %s382_s1 = inlined_call_operand.hbm [shape: f32[128,128], index: 1, kind: input, shape index: {}]   ;;  %s383_s2 = inlined_call_operand.vmem [shape: f32[1,128], index: 2, kind: input, shape index: {}]   ;;  %s384_s3 = inlined_call_operand.vmem [shape: f32[1,128], index: 3, kind: input, shape index: {}]   ;;  %s385_s4 = inlined_call_operand.<no memory space> [shape: f32[1,1], index: 4, kind: input, shape index: {}]   ;;  %s386_s5 = inlined_call_operand.vmem [shape: f32[8,1], index: 5, kind: output, shape index: {}]  }
   0x1   :  { %12 = vsyncpa [#allocation6], 0  ;;  %s301_s18 = smov [#allocation3]   ;;  %s302_s20 = smov [#allocation5]  }
   0x2   :  { %s19_s19 = sshll.u32 %s301_s18, 4  ;;  %s28_s21 = sshll.u32 %s302_s20, 4  ;;  %s20_s19 = int_to_ptr.vmem [resolvable:$true] %s19_s19  ;;  %s338_s21 = int_to_ptr.vmem [resolvable:$true] %s28_s21 }
   0x3   :  { %s253_s24 = scalar_lea.hbm %s381_s0, 128 }
   0x4   :  { %p254_p0 = scmp.ne.s32.totalorder %s381_s0, %s253_s24  ;;  %p257_p1 = scmp.lt.u32.totalorder %s253_s24, %s381_s0 }
   0x6   :  { %p259_p2 = pnand %p257_p1, %p254_p0 }
   0x8   :  { %262 = shalt.err (!%p259_p2)
}
   0x9   :  { %s263_s29 = scalar_lea.vmem %s20_s19, 128  ;;  %p268_p4 = scmp.lt.s32.totalorder %s20_s19, %s20_s19 }
   0xa   :  { %p264_p3 = scmp.ne.s32.totalorder %s20_s19, %s263_s29  ;;  %p269_p5 = scmp.lt.s32.totalorder %s263_s29, %s263_s29 }
   0xc   :  { %p270_p6 = por %p269_p5, %p268_p4 }
   0xe   :  { %p271_p7 = pnand %p270_p6, %p264_p3 }
  0x10   :  { %274 = shalt.err (!%p271_p7)
}
  0x11   :  { %22 = dma.hbm_to_vmem [thread:$0]  %s381_s0, 128, %s20_s19, [#allocation4]  }
  0x12   :  { %s275_s9 = scalar_lea.hbm %s382_s1, 2048 }
  0x13   :  { %p276_p8 = scmp.ne.s32.totalorder %s382_s1, %s275_s9  ;;  %p279_p9 = scmp.lt.u32.totalorder %s275_s9, %s382_s1 }
  0x15   :  { %p281_p10 = pnand %p279_p9, %p276_p8 }
  0x17   :  { %284 = shalt.err (!%p281_p10)
}
  0x18   :  { %s285_s14 = scalar_lea.vmem %s338_s21, 2048  ;;  %p290_p12 = scmp.lt.s32.totalorder %s338_s21, %s338_s21 }
  0x19   :  { %p286_p11 = scmp.ne.s32.totalorder %s338_s21, %s285_s14  ;;  %p291_p13 = scmp.lt.s32.totalorder %s285_s14, %s285_s14 }
  0x1b   :  { %p292_p0 = por %p291_p13, %p290_p12 }
  0x1d   :  { %p293_p1 = pnand %p292_p0, %p286_p11 }
  0x1f   :  { %296 = shalt.err (!%p293_p1)
}
  0x20   :  { %s303_s0 = smov 128   ;;  %s304_s15 = smov 8  }
  0x21   :  { %34 = dma.hbm_to_vmem [thread:$0]  %s382_s1, 2048, %s338_s21, [#allocation6], %s303_s0, %s303_s0, %s304_s15  }
  0x22   :  { %297 = dma.done.wait [#allocation4], 128  }
  0x23   :  { %298 = vsyncadd [#allocation4], 4294967168 }
  0x24   :  { %299 = dma.done.wait [#allocation6], 2048  }
  0x25   :  { %300 = vsyncadd [#allocation6], 4294965248  ;;  %v305_v0 = vmov 0.0|0.0   ;;  %vm306_vm0 = vmmov 0   ;;  %v307_v1 = vmov 0.0   ;;  %v48_v2 = vld [vmem:[#allocation5] sm:$0xff]  ;;  %v155_v35 = vstv %s385_s4 }
  0x26   :  { %222 = vmatprep.subr.bf16.mxu0 %v305_v0  ;;  %219 = vmatprep.mubr.msk.f32.mxu0 %vm306_vm0, %v307_v1  ;;  %v49_v3 = vld [vmem:[#allocation5 + $0x8] sm:$0xff]  ;;  %v50_v4 = vld [vmem:[#allocation5 + $0x10] sm:$0xff]  ;;  %v51_v6 = vld [vmem:[#allocation5 + $0x18] sm:$0xff]  ;;  %vm160_vm3 = vcmask 7168  }
  0x27   :  { %v223_v5 = vpack.c.bf16 %v49_v3, %v48_v2  ;;  %v226_v7 = vpack.c.bf16 %v51_v6, %v50_v4  ;;  %v52_v8 = vld [vmem:[#allocation5 + $0x20] sm:$0xff]  ;;  %v53_v9 = vld [vmem:[#allocation5 + $0x28] sm:$0xff]  ;;  %v54_v11 = vld [vmem:[#allocation5 + $0x30] sm:$0xff] }
  0x28   :  { %v229_v10 = vpack.c.bf16 %v53_v9, %v52_v8  ;;  %v55_v12 = vld [vmem:[#allocation5 + $0x38] sm:$0xff]  ;;  %v56_v14 = vld [vmem:[#allocation5 + $0x40] sm:$0xff]  ;;  %v57_v15 = vld [vmem:[#allocation5 + $0x48] sm:$0xff] }
  0x29   :  { %224 = vmatpush3.bf16.msra.mxu0 %v223_v5  ;;  %v232_v13 = vpack.c.bf16 %v55_v12, %v54_v11  ;;  %v235_v16 = vpack.c.bf16 %v57_v15, %v56_v14  ;;  %v58_v17 = vld [vmem:[#allocation5 + $0x50] sm:$0xff]  ;;  %v59_v18 = vld [vmem:[#allocation5 + $0x58] sm:$0xff]  ;;  %v60_v20 = vld [vmem:[#allocation5 + $0x60] sm:$0xff] }
  0x2a   :  { %225 = vmatprep.subr.bf16.mxu0 %v305_v0  ;;  %v238_v19 = vpack.c.bf16 %v59_v18, %v58_v17  ;;  %v61_v21 = vld [vmem:[#allocation5 + $0x68] sm:$0xff]  ;;  %v62_v23 = vld [vmem:[#allocation5 + $0x70] sm:$0xff]  ;;  %v63_v24 = vld [vmem:[#allocation5 + $0x78] sm:$0xff] }
  0x2b   :  { %v241_v22 = vpack.c.bf16 %v61_v21, %v60_v20  ;;  %v244_v25 = vpack.c.bf16 %v63_v24, %v62_v23  ;;  %v47_v26 = vld [vmem:[#allocation3] sm:$0xff] }
  0x2c   :  { %v168_v27 = vld [vmem:[%s383_s2] ss:$0 sm:$0xff] }
  0x2d   :  { %227 = vmatpush3.bf16.msra.mxu0 %v226_v7  ;;  %v169_v32 = vld [vmem:[%s384_s3] ss:$0 sm:$0xff] }
  0x2e   :  { %228 = vmatprep.subr.bf16.mxu0 %v305_v0 }
  0x31   :  { %230 = vmatpush3.bf16.msra.mxu0 %v229_v10 }
  0x32   :  { %231 = vmatprep.subr.bf16.mxu0 %v305_v0 }
  0x35   :  { %233 = vmatpush3.bf16.msra.mxu0 %v232_v13 }
  0x36   :  { %234 = vmatprep.subr.bf16.mxu0 %v305_v0 }
  0x39   :  { %236 = vmatpush3.bf16.msra.mxu0 %v235_v16 }
  0x3a   :  { %237 = vmatprep.subr.bf16.mxu0 %v305_v0 }
  0x3d   :  { %239 = vmatpush3.bf16.msra.mxu0 %v238_v19 }
  0x3e   :  { %240 = vmatprep.subr.bf16.mxu0 %v305_v0 }
  0x41   :  { %242 = vmatpush3.bf16.msra.mxu0 %v241_v22 }
  0x42   :  { %243 = vmatprep.subr.bf16.mxu0 %v305_v0 }
  0x45   :  { %245 = vmatpush3.bf16.msra.mxu0 %v244_v25 }
  0x48   :  { %220 = vmatmul.mubr.f32.vlgmr.msra.gmra.mrb[0].mxu0 %v47_v26 }
 0x11b   :  { %v137_v28 = vpop.f32.mrb[0].mxu0 }
 0x11c   :  { %v138_v29 = vadd.f32 %v168_v27, %v137_v28  ;;  %v221_v30 = vpop.f32.mrb[1].mxu0 }
 0x11e   :  { %v142_v31 = vmul.f32 0.01, %v138_v29  ;;  %vm141_vm1 = vcmp.gt.f32.partialorder %v138_v29, 0.0 }
 0x120   :  { %v143_v33 = vsel %vm141_vm1, %v138_v29, %v142_v31 }
 0x121   :  { %v151_v34 = vmul.f32 %v169_v32, %v143_v33 }
 0x123   :  { %152 = vadd.xlane.f32.xlu0 %v151_v34 }
 0x1b0   :  { %v153_v36 = vpop.xlane.xlu0 %152 }
 0x1b1   :  { %v156_v37 = vadd.f32 %v155_v35, %v153_v36 }
 0x1b3   :  { %vm157_vm2 = vcmp.gt.f32.partialorder %v156_v37, 0.0  ;;  %v158_v38 = vmul.f32 0.01, %v156_v37 }
 0x1b5   :  { %v159_v39 = vsel %vm157_vm2, %v156_v37, %v158_v38 }
 0x1b6   :  { %161 = vst.msk [vmem:[%s386_s5] sm:$0xff] %vm160_vm3, %v159_v39 }
 0x1b7   :  { %166 = vsyncpa [#allocation4], 1 }
 0x1b8   :  { %167 = vsyncpa [#allocation6], 1 }

</bundles_post_ra>
